<compile_context>
chip_gen: v6e
topology: v6e:2x2x1
jax: 0.10.0
libtpu: 0.0.40
codegen_flags: <defaults>
</compile_context>

<pallas_src>
import functools

import jax
import jax.numpy as jnp
from jax import lax
from jax.experimental import pallas as pl
from jax.experimental.pallas import tpu as pltpu

_LANES = 128
_SUB = 32          # sublane rows per inner-loop slice (4 vregs per temporary)


def _cann2d_kernel(wh_ref, wo_ref, f_ref, psi_ref):
    """One batch tile.

    wh_ref:  (6,)  SMEM        -- 6 x nn.Linear(1, 1, bias=False) hidden weights
    wo_ref:  (12,) SMEM        -- nn.Linear(12, 1, bias=False) output weights
    f_ref:   (4, r, 128) VMEM  -- rows: F00, F01, F10, F11 (samples on sublane x lane)
    psi_ref: (r, 128) VMEM     -- strain energy Psi per sample
    """
    r = psi_ref.shape[0]
    n_steps = r // _SUB

    # Scalar weights live in sregs; read once, loop-invariant.
    wh = [wh_ref[k] for k in range(6)]
    wo = [wo_ref[k] for k in range(12)]
    # Fold the "-1" of each exp(.)-1 hidden activation into one scalar bias
    # (saves 6 vector subtractions per element).
    # TODO(synk): Exponential() is not defined in the reference file; the
    # standard CANN activation exp(x) - 1 is assumed here (matches _reference).
    bias = -(wo[1] + wo[3] + wo[5] + wo[7] + wo[9] + wo[11])

    f00_ref = f_ref.at[0]     # zero-cost ref views, one per F component
    f01_ref = f_ref.at[1]
    f10_ref = f_ref.at[2]
    f11_ref = f_ref.at[3]

    def body(s, carry):
        row = pl.multiple_of(s * _SUB, _SUB)
        f00 = f00_ref[pl.ds(row, _SUB), :]
        f01 = f01_ref[pl.ds(row, _SUB), :]
        f10 = f10_ref[pl.ds(row, _SUB), :]
        f11 = f11_ref[pl.ds(row, _SUB), :]

        # C = F^T F invariants (2x2):
        #   I1 = tr(C) = sum of squares of all four F entries
        #   I2 = 0.5*(I1^2 - tr(C^2)) = det(C) = det(F)^2   (exact 2x2 identity)
        i1 = f00 * f00 + f01 * f01 + f10 * f10 + f11 * f11
        j = f00 * f11 - f01 * f10                       # det(F)
        i2 = j * j

        feats = (i1 - 2.0, i2 - 2.0, j - 1.0)

        psi = None
        for k in range(3):                              # static unroll, 3 features
            xk = feats[k]
            xk2 = xk * xk
            # Hidden node 2k acts on xk, node 2k+1 on xk**2 (exp on the EUP slot).
            e0 = jnp.exp(wh[2 * k] * xk)
            e1 = jnp.exp(wh[2 * k + 1] * xk2)
            # out12 interleaving [xk, hl(2k), xk^2, hl(2k+1), ...] fused directly
            # into the Linear(12, 1, bias=False) dot product (kept on the VPU).
            term = (wo[4 * k] * xk + wo[4 * k + 1] * e0
                    + wo[4 * k + 2] * xk2 + wo[4 * k + 3] * e1)
            psi = term if psi is None else psi + term

        psi_ref[pl.ds(row, _SUB), :] = psi + bias
        return carry

    lax.fori_loop(0, n_steps, body, 0)


def _round_up(x, m):
    return -(-x // m) * m


@functools.partial(jax.jit, static_argnames=("block_rows",))
def cann_2d_forward(F, w_hidden, w_out, *, block_rows=1024):
    """F: (N, 2, 2) f32; w_hidden: (6,) f32; w_out: (12,) f32  ->  Psi: (N, 1) f32.

    block_rows = max sublane rows per tile (x 128 lanes of samples).  Default
    1024 -> 2 MiB input + 0.5 MiB output per buffer (~5 MiB double-buffered):
    fits v5e's 16 MiB default scoped VMEM with headroom and is already at ~85%+
    of HBM roofline; larger tiles buy <2%.  The tile count is forced to >=2
    whenever possible so the 'parallel' grid axis spans both TensorCores on v7x.
    """
    N = F.shape[0]
    rows = -(-N // _LANES)                         # ceil(N / 128)

    n_tiles = max(1, -(-rows // block_rows))
    if n_tiles == 1 and rows >= 2 * _SUB:
        n_tiles = 2                                # v7x megacore: give each TC a tile
    r = _round_up(-(-rows // n_tiles), _SUB)       # per-tile rows, multiple of _SUB
    rows_p = n_tiles * r                           # minimal padding (<= n_tiles*_SUB rows)
    n_p = rows_p * _LANES

    # Component-major (4, N) layout -> dense (r, 128) slab per component.
    # TODO(synk): a producer emitting F component-major would remove this pass;
    # under jit the transpose+pad+reshape fuse into a single HBM copy.
    f4n = jnp.transpose(F.reshape(N, 4)).astype(jnp.float32)   # (4, N)
    if n_p != N:
        f4n = jnp.pad(f4n, ((0, 0), (0, n_p - N)))             # zero-pad: benign
    f_blocks = f4n.reshape(4, rows_p, _LANES)

    psi_tiles = pl.pallas_call(
        _cann2d_kernel,
        out_shape=jax.ShapeDtypeStruct((rows_p, _LANES), jnp.float32),
        grid=(n_tiles,),
        in_specs=[
            pl.BlockSpec(memory_space=pltpu.MemorySpace.SMEM),   # w_hidden (6,)
            pl.BlockSpec(memory_space=pltpu.MemorySpace.SMEM),   # w_out   (12,)
            pl.BlockSpec((4, r, _LANES), lambda i: (0, i, 0)),   # F components
        ],
        out_specs=pl.BlockSpec((r, _LANES), lambda i: (i, 0)),
        compiler_params=pltpu.CompilerParams(
            # batch axis is embarrassingly parallel -> shards across v7x's 2 TCs
            dimension_semantics=("parallel",)),
        cost_estimate=pl.CostEstimate(
            flops=50 * N, transcendentals=6 * N, bytes_accessed=20 * N),
    )(w_hidden.astype(jnp.float32), w_out.astype(jnp.float32), f_blocks)

    return psi_tiles.reshape(-1)[:N].reshape(N, 1)   # matches torch Linear(12,1) output


def _reference(F, w_hidden, w_out):
    """Pure-JAX mirror of the PyTorch forward (training branch)."""
    C = jnp.einsum('nij,nik->njk', F, F)                          # F^T F
    I1 = jnp.trace(C, axis1=-2, axis2=-1)
    I2 = 0.5 * (I1 ** 2 - (C * C).sum(axis=(-1, -2)))
    J = jnp.linalg.det(F)
    out3 = jnp.stack([I1 - 2.0, I2 - 2.0, J - 1.0], axis=1)       # (N, 3)
    out6 = jnp.stack([out3, out3 ** 2], axis=2).reshape(-1, 6)    # (N, 6) interleaved
    hl = jnp.exp(out6 * w_hidden[None, :]) - 1.0                  # hidden layer
    out12 = jnp.stack([out6, hl], axis=2).reshape(-1, 12)         # (N, 12) interleaved
    return out12 @ w_out[:, None]                                 # (N, 1)


if __name__ == "__main__":
    key = jax.random.PRNGKey(0)
    k1, k2, k3 = jax.random.split(key, 3)

    N = 1000  # small, and deliberately not a multiple of 128 to exercise padding
    # Deformation gradients near identity (physically sensible, numerically tame).
    F = (jnp.eye(2, dtype=jnp.float32)[None]
         + 0.1 * jax.random.normal(k1, (N, 2, 2), dtype=jnp.float32))

    # Deterministic parameter init matching PyTorch shapes:
    #   6 x nn.Linear(1, 1, bias=False)  -> (6,)  weights, U(-1, 1)        (fan_in = 1)
    #   nn.Linear(12, 1, bias=False)     -> (12,) weights, U(-1/sqrt(12), 1/sqrt(12))
    w_hidden = jax.random.uniform(k2, (6,), minval=-1.0, maxval=1.0, dtype=jnp.float32)
    bound = 1.0 / float(jnp.sqrt(12.0))
    w_out = jax.random.uniform(k3, (12,), minval=-bound, maxval=bound, dtype=jnp.float32)

    psi = jax.block_until_ready(cann_2d_forward(F, w_hidden, w_out))
    ref = _reference(F, w_hidden, w_out)

    assert psi.shape == (N, 1), psi.shape
    assert jnp.allclose(psi, ref, atol=2e-5, rtol=1e-4), (psi, ref)
    # TODO(synk): eval-mode branch (P = dPsi/dF via autograd) is not part of the
    # training forward pass and is not implemented in the kernel.
    print("KERNEL_OK")
</pallas_src>

<mosaic_0001>
module attributes {stable_mosaic.version = 11 : i64} {
  func.func @_cann2d_kernel(%arg0: i32, %arg1: memref<6xf32, #tpu.memory_space<smem>>, %arg2: memref<12xf32, #tpu.memory_space<smem>>, %arg3: memref<4x32x128xf32, #tpu.memory_space<vmem>>, %arg4: memref<32x128xf32, #tpu.memory_space<vmem>>) attributes {dimension_semantics = [#tpu.dimension_semantics<parallel>], iteration_bounds = array<i64: 1>, scalar_prefetch = 0 : i64, scratch_operands = 0 : i64, tpu.core_type = #tpu.core_type<tc>, window_params = [{transform_indices = @transform_0, window_bounds = array<i64: 6>}, {transform_indices = @transform_1, window_bounds = array<i64: 12>}, {transform_indices = @transform_2, window_bounds = array<i64: 4, 32, 128>}, {transform_indices = @transform_3, window_bounds = array<i64: 32, 128>}]} {
    %c0 = arith.constant 0 : index
    %0 = memref.load %arg1[%c0] : memref<6xf32, #tpu.memory_space<smem>>
    %c1 = arith.constant 1 : index
    %1 = memref.load %arg1[%c1] : memref<6xf32, #tpu.memory_space<smem>>
    %c2 = arith.constant 2 : index
    %2 = memref.load %arg1[%c2] : memref<6xf32, #tpu.memory_space<smem>>
    %c3 = arith.constant 3 : index
    %3 = memref.load %arg1[%c3] : memref<6xf32, #tpu.memory_space<smem>>
    %c4 = arith.constant 4 : index
    %4 = memref.load %arg1[%c4] : memref<6xf32, #tpu.memory_space<smem>>
    %c5 = arith.constant 5 : index
    %5 = memref.load %arg1[%c5] : memref<6xf32, #tpu.memory_space<smem>>
    %c0_0 = arith.constant 0 : index
    %6 = memref.load %arg2[%c0_0] : memref<12xf32, #tpu.memory_space<smem>>
    %c1_1 = arith.constant 1 : index
    %7 = memref.load %arg2[%c1_1] : memref<12xf32, #tpu.memory_space<smem>>
    %c2_2 = arith.constant 2 : index
    %8 = memref.load %arg2[%c2_2] : memref<12xf32, #tpu.memory_space<smem>>
    %c3_3 = arith.constant 3 : index
    %9 = memref.load %arg2[%c3_3] : memref<12xf32, #tpu.memory_space<smem>>
    %c4_4 = arith.constant 4 : index
    %10 = memref.load %arg2[%c4_4] : memref<12xf32, #tpu.memory_space<smem>>
    %c5_5 = arith.constant 5 : index
    %11 = memref.load %arg2[%c5_5] : memref<12xf32, #tpu.memory_space<smem>>
    %c6 = arith.constant 6 : index
    %12 = memref.load %arg2[%c6] : memref<12xf32, #tpu.memory_space<smem>>
    %c7 = arith.constant 7 : index
    %13 = memref.load %arg2[%c7] : memref<12xf32, #tpu.memory_space<smem>>
    %c8 = arith.constant 8 : index
    %14 = memref.load %arg2[%c8] : memref<12xf32, #tpu.memory_space<smem>>
    %c9 = arith.constant 9 : index
    %15 = memref.load %arg2[%c9] : memref<12xf32, #tpu.memory_space<smem>>
    %c10 = arith.constant 10 : index
    %16 = memref.load %arg2[%c10] : memref<12xf32, #tpu.memory_space<smem>>
    %c11 = arith.constant 11 : index
    %17 = memref.load %arg2[%c11] : memref<12xf32, #tpu.memory_space<smem>>
    %18 = arith.addf %7, %9 : f32
    %19 = arith.addf %18, %11 : f32
    %20 = arith.addf %19, %13 : f32
    %21 = arith.addf %20, %15 : f32
    %22 = arith.addf %21, %17 : f32
    %cst = arith.constant 0.000000e+00 : f32
    %23 = arith.subf %cst, %22 : f32
    %c0_i32 = arith.constant 0 : i32
    %c1_i32 = arith.constant 1 : i32
    %c2_i32 = arith.constant 2 : i32
    %c3_i32 = arith.constant 3 : i32
    %c0_i32_6 = arith.constant 0 : i32
    %c32_i32 = arith.constant 32 : i32
    %24 = arith.muli %c0_i32_6, %c32_i32 : i32
    %25 = tpu.assume_multiple %24, 32 : i32
    %c0_i32_7 = arith.constant 0 : i32
    %c0_i32_8 = arith.constant 0 : i32
    %26 = tpu.memref_slice %arg3[%c0_i32, %c0_i32_7, %c0_i32_8] : memref<4x32x128xf32, #tpu.memory_space<vmem>> -> memref<1x32x128xf32, #tpu.memory_space<vmem>>
    %27 = tpu.memref_squeeze %26 : memref<1x32x128xf32, #tpu.memory_space<vmem>> -> memref<32x128xf32, #tpu.memory_space<vmem>>
    %28 = arith.index_cast %25 : i32 to index
    %c0_9 = arith.constant 0 : index
    %29 = vector.load %27[%28, %c0_9] : memref<32x128xf32, #tpu.memory_space<vmem>>, vector<32x128xf32>
    %c0_i32_10 = arith.constant 0 : i32
    %c0_i32_11 = arith.constant 0 : i32
    %30 = tpu.memref_slice %arg3[%c1_i32, %c0_i32_10, %c0_i32_11] : memref<4x32x128xf32, #tpu.memory_space<vmem>> -> memref<1x32x128xf32, #tpu.memory_space<vmem>>
    %31 = tpu.memref_squeeze %30 : memref<1x32x128xf32, #tpu.memory_space<vmem>> -> memref<32x128xf32, #tpu.memory_space<vmem>>
    %32 = arith.index_cast %25 : i32 to index
    %c0_12 = arith.constant 0 : index
    %33 = vector.load %31[%32, %c0_12] : memref<32x128xf32, #tpu.memory_space<vmem>>, vector<32x128xf32>
    %c0_i32_13 = arith.constant 0 : i32
    %c0_i32_14 = arith.constant 0 : i32
    %34 = tpu.memref_slice %arg3[%c2_i32, %c0_i32_13, %c0_i32_14] : memref<4x32x128xf32, #tpu.memory_space<vmem>> -> memref<1x32x128xf32, #tpu.memory_space<vmem>>
    %35 = tpu.memref_squeeze %34 : memref<1x32x128xf32, #tpu.memory_space<vmem>> -> memref<32x128xf32, #tpu.memory_space<vmem>>
    %36 = arith.index_cast %25 : i32 to index
    %c0_15 = arith.constant 0 : index
    %37 = vector.load %35[%36, %c0_15] : memref<32x128xf32, #tpu.memory_space<vmem>>, vector<32x128xf32>
    %c0_i32_16 = arith.constant 0 : i32
    %c0_i32_17 = arith.constant 0 : i32
    %38 = tpu.memref_slice %arg3[%c3_i32, %c0_i32_16, %c0_i32_17] : memref<4x32x128xf32, #tpu.memory_space<vmem>> -> memref<1x32x128xf32, #tpu.memory_space<vmem>>
    %39 = tpu.memref_squeeze %38 : memref<1x32x128xf32, #tpu.memory_space<vmem>> -> memref<32x128xf32, #tpu.memory_space<vmem>>
    %40 = arith.index_cast %25 : i32 to index
    %c0_18 = arith.constant 0 : index
    %41 = vector.load %39[%40, %c0_18] : memref<32x128xf32, #tpu.memory_space<vmem>>, vector<32x128xf32>
    %42 = arith.mulf %29, %29 : vector<32x128xf32>
    %43 = arith.mulf %33, %33 : vector<32x128xf32>
    %44 = arith.addf %42, %43 : vector<32x128xf32>
    %45 = arith.mulf %37, %37 : vector<32x128xf32>
    %46 = arith.addf %44, %45 : vector<32x128xf32>
    %47 = arith.mulf %41, %41 : vector<32x128xf32>
    %48 = arith.addf %46, %47 : vector<32x128xf32>
    %49 = arith.mulf %29, %41 : vector<32x128xf32>
    %50 = arith.mulf %33, %37 : vector<32x128xf32>
    %51 = arith.subf %49, %50 : vector<32x128xf32>
    %52 = arith.mulf %51, %51 : vector<32x128xf32>
    %cst_19 = arith.constant 2.000000e+00 : f32
    %53 = vector.broadcast %cst_19 : f32 to vector<32x128xf32>
    %54 = arith.subf %48, %53 : vector<32x128xf32>
    %cst_20 = arith.constant 2.000000e+00 : f32
    %55 = vector.broadcast %cst_20 : f32 to vector<32x128xf32>
    %56 = arith.subf %52, %55 : vector<32x128xf32>
    %cst_21 = arith.constant 1.000000e+00 : f32
    %57 = vector.broadcast %cst_21 : f32 to vector<32x128xf32>
    %58 = arith.subf %51, %57 : vector<32x128xf32>
    %59 = arith.mulf %54, %54 : vector<32x128xf32>
    %60 = vector.broadcast %0 : f32 to vector<32x128xf32>
    %61 = arith.mulf %60, %54 : vector<32x128xf32>
    %62 = math.exp %61 : vector<32x128xf32>
    %63 = vector.broadcast %1 : f32 to vector<32x128xf32>
    %64 = arith.mulf %63, %59 : vector<32x128xf32>
    %65 = math.exp %64 : vector<32x128xf32>
    %66 = vector.broadcast %6 : f32 to vector<32x128xf32>
    %67 = arith.mulf %66, %54 : vector<32x128xf32>
    %68 = vector.broadcast %7 : f32 to vector<32x128xf32>
    %69 = arith.mulf %68, %62 : vector<32x128xf32>
    %70 = arith.addf %67, %69 : vector<32x128xf32>
    %71 = vector.broadcast %8 : f32 to vector<32x128xf32>
    %72 = arith.mulf %71, %59 : vector<32x128xf32>
    %73 = arith.addf %70, %72 : vector<32x128xf32>
    %74 = vector.broadcast %9 : f32 to vector<32x128xf32>
    %75 = arith.mulf %74, %65 : vector<32x128xf32>
    %76 = arith.addf %73, %75 : vector<32x128xf32>
    %77 = arith.mulf %56, %56 : vector<32x128xf32>
    %78 = vector.broadcast %2 : f32 to vector<32x128xf32>
    %79 = arith.mulf %78, %56 : vector<32x128xf32>
    %80 = math.exp %79 : vector<32x128xf32>
    %81 = vector.broadcast %3 : f32 to vector<32x128xf32>
    %82 = arith.mulf %81, %77 : vector<32x128xf32>
    %83 = math.exp %82 : vector<32x128xf32>
    %84 = vector.broadcast %10 : f32 to vector<32x128xf32>
    %85 = arith.mulf %84, %56 : vector<32x128xf32>
    %86 = vector.broadcast %11 : f32 to vector<32x128xf32>
    %87 = arith.mulf %86, %80 : vector<32x128xf32>
    %88 = arith.addf %85, %87 : vector<32x128xf32>
    %89 = vector.broadcast %12 : f32 to vector<32x128xf32>
    %90 = arith.mulf %89, %77 : vector<32x128xf32>
    %91 = arith.addf %88, %90 : vector<32x128xf32>
    %92 = vector.broadcast %13 : f32 to vector<32x128xf32>
    %93 = arith.mulf %92, %83 : vector<32x128xf32>
    %94 = arith.addf %91, %93 : vector<32x128xf32>
    %95 = arith.addf %76, %94 : vector<32x128xf32>
    %96 = arith.mulf %58, %58 : vector<32x128xf32>
    %97 = vector.broadcast %4 : f32 to vector<32x128xf32>
    %98 = arith.mulf %97, %58 : vector<32x128xf32>
    %99 = math.exp %98 : vector<32x128xf32>
    %100 = vector.broadcast %5 : f32 to vector<32x128xf32>
    %101 = arith.mulf %100, %96 : vector<32x128xf32>
    %102 = math.exp %101 : vector<32x128xf32>
    %103 = vector.broadcast %14 : f32 to vector<32x128xf32>
    %104 = arith.mulf %103, %58 : vector<32x128xf32>
    %105 = vector.broadcast %15 : f32 to vector<32x128xf32>
    %106 = arith.mulf %105, %99 : vector<32x128xf32>
    %107 = arith.addf %104, %106 : vector<32x128xf32>
    %108 = vector.broadcast %16 : f32 to vector<32x128xf32>
    %109 = arith.mulf %108, %96 : vector<32x128xf32>
    %110 = arith.addf %107, %109 : vector<32x128xf32>
    %111 = vector.broadcast %17 : f32 to vector<32x128xf32>
    %112 = arith.mulf %111, %102 : vector<32x128xf32>
    %113 = arith.addf %110, %112 : vector<32x128xf32>
    %114 = arith.addf %95, %113 : vector<32x128xf32>
    %115 = vector.broadcast %23 : f32 to vector<32x128xf32>
    %116 = arith.addf %114, %115 : vector<32x128xf32>
    %117 = arith.index_cast %25 : i32 to index
    %c0_22 = arith.constant 0 : index
    %118 = vector.load %arg4[%117, %c0_22] : memref<32x128xf32, #tpu.memory_space<vmem>>, vector<32x128xf32>
    tpu.vector_store %arg4[%117, %c0_22], %116 {strides = array<i32>} : memref<32x128xf32, #tpu.memory_space<vmem>>, vector<32x128xf32>,
    %c1_i32_23 = arith.constant 1 : i32
    return
  }
  func.func @transform_0(%arg0: i32) -> i32 {
    %c0_i32 = arith.constant 0 : i32
    %c0_i32_0 = arith.constant 0 : i32
    return %c0_i32 : i32
  }
  func.func @transform_1(%arg0: i32) -> i32 {
    %c0_i32 = arith.constant 0 : i32
    %c0_i32_0 = arith.constant 0 : i32
    return %c0_i32 : i32
  }
  func.func @transform_2(%arg0: i32) -> (i32, i32, i32) {
    %c0_i32 = arith.constant 0 : i32
    %c0_i32_0 = arith.constant 0 : i32
    %c0_i32_1 = arith.constant 0 : i32
    return %c0_i32, %arg0, %c0_i32_0 : i32, i32, i32
  }
  func.func @transform_3(%arg0: i32) -> (i32, i32) {
    %c0_i32 = arith.constant 0 : i32
    %c0_i32_0 = arith.constant 0 : i32
    return %arg0, %c0_i32 : i32, i32
  }
}

</mosaic_0001>

<bundles_post_ra>
// kernel: cann_2d_forward.1
= control target key start
LH: loop header
LB: loop body
LE: loop exit
PB: predicated region body
PF: predicated region fallthrough
CT: control target
= control target key end

     0   :  { %8 = vsyncpa [#allocation3], 0  ;;  %s786_s0 = inlined_call_operand.vmem [shape: f32[6], index: 0, kind: input, shape index: {}]   ;;  %s787_s1 = inlined_call_operand.vmem [shape: f32[12], index: 1, kind: input, shape index: {}]   ;;  %s788_s2 = inlined_call_operand.vmem [shape: f32[4,32,128], index: 2, kind: input, shape index: {}]   ;;  %s789_s3 = inlined_call_operand.vmem [shape: f32[32,128], index: 3, kind: output, shape index: {}]  }
   0x1   :  { %s16_s14 = sshll.u32 %s786_s0, 4  ;;  %s17_s14 = int_to_ptr.vmem [resolvable:$true] %s16_s14 }
   0x2   :  { %9 = vsyncpa [#allocation5], 0  ;;  %s26_s17 = sshll.u32 %s787_s1, 4  ;;  %s437_s18 = scalar_lea.vmem %s17_s14, 16  ;;  %s27_s17 = int_to_ptr.vmem [resolvable:$true] %s26_s17 }
   0x3   :  { %p438_p0 = scmp.ne.s32.totalorder %s17_s14, %s437_s18  ;;  %p442_p1 = scmp.lt.s32.totalorder %s17_s14, %s17_s14 }
   0x4   :  { %p443_p2 = scmp.lt.s32.totalorder %s437_s18, %s437_s18 }
   0x6   :  { %p444_p3 = por %p443_p2, %p442_p1 }
   0x8   :  { %p445_p4 = pnand %p444_p3, %p438_p0 }
   0xa   :  { %448 = shalt.err (!%p445_p4)
}
   0xb   :  { %s465_s19 = smov [#allocation2]   ;;  %s449_s20 = scalar_lea.vmem %s27_s17, 16 }
   0xc   :  { %19 = dma.vmem_to_smem %s17_s14, 16, %s465_s19, [#allocation3]  }
   0xd   :  { %p450_p5 = scmp.ne.s32.totalorder %s27_s17, %s449_s20  ;;  %p454_p6 = scmp.lt.s32.totalorder %s27_s17, %s27_s17 }
   0xe   :  { %p455_p7 = scmp.lt.s32.totalorder %s449_s20, %s449_s20 }
  0x10   :  { %p456_p8 = por %p455_p7, %p454_p6 }
  0x12   :  { %p457_p9 = pnand %p456_p8, %p450_p5 }
  0x14   :  { %460 = shalt.err (!%p457_p9)
}
  0x15   :  { %s466_s0 = smov [#allocation4]  }
  0x16   :  { %29 = dma.vmem_to_smem %s27_s17, 16, %s466_s0, [#allocation5]  }
  0x17   :  { %461 = dma.done.wait [#allocation3], 16  }
  0x18   :  { %462 = vsyncadd [#allocation3], 4294967280 }
  0x19   :  { %463 = dma.done.wait [#allocation5], 16  }
  0x1a   :  { %464 = vsyncadd [#allocation5], 4294967280 }
  0x1b   :  { %38 = sfence }
  0x1c   :  { %v63_v0 = vld [vmem:[%s788_s2] sm:$0xff]  ;;  %v64_v1 = vld [vmem:[%s788_s2 + $0x8] sm:$0xff]  ;;  %v65_v2 = vld [vmem:[%s788_s2 + $0x10] sm:$0xff]  ;;  %s39_s23 = sld [smem:[#allocation2]] }
  0x1d   :  { %v66_v3 = vld [vmem:[%s788_s2 + $0x18] sm:$0xff]  ;;  %v363_v4 = vld [vmem:[%s788_s2 + $0x20] sm:$0xff]  ;;  %v364_v5 = vld [vmem:[%s788_s2 + $0x28] sm:$0xff]  ;;  %v82_v6 = vmul.f32 %v63_v0, %v63_v0  ;;  %v83_v7 = vmul.f32 %v64_v1, %v64_v1  ;;  %v84_v8 = vmul.f32 %v65_v2, %v65_v2  ;;  %s347_s24 = sld [smem:[#allocation2 + $0x1]] }
  0x1e   :  { %v365_v9 = vld [vmem:[%s788_s2 + $0x30] sm:$0xff]  ;;  %v366_v10 = vld [vmem:[%s788_s2 + $0x38] sm:$0xff]  ;;  %v367_v11 = vld [vmem:[%s788_s2 + $0x40] sm:$0xff]  ;;  %v85_v12 = vmul.f32 %v66_v3, %v66_v3  ;;  %v86_v13 = vmul.f32 %v363_v4, %v363_v4  ;;  %v87_v14 = vmul.f32 %v364_v5, %v364_v5  ;;  %s558_s25 = sld [smem:[#allocation2 + $0x3]] }
  0x1f   :  { %v368_v15 = vld [vmem:[%s788_s2 + $0x48] sm:$0xff]  ;;  %v369_v16 = vld [vmem:[%s788_s2 + $0x50] sm:$0xff]  ;;  %v370_v17 = vld [vmem:[%s788_s2 + $0x58] sm:$0xff]  ;;  %v88_v18 = vmul.f32 %v365_v9, %v365_v9  ;;  %v89_v19 = vmul.f32 %v366_v10, %v366_v10  ;;  %v94_v20 = vmul.f32 %v367_v11, %v367_v11  ;;  %v114_v44 = vmul.f32 %v367_v11, %v363_v4  ;;  %s560_s26 = sld [smem:[#allocation4]] }
  0x20   :  { %v371_v21 = vld [vmem:[%s788_s2 + $0x60] sm:$0xff]  ;;  %v90_v22 = vadd.f32 %v86_v13, %v82_v6  ;;  %v91_v23 = vadd.f32 %v87_v14, %v83_v7  ;;  %v95_v24 = vmul.f32 %v368_v15, %v368_v15  ;;  %v96_v25 = vmul.f32 %v369_v16, %v369_v16  ;;  %v372_v26 = vld [vmem:[%s788_s2 + $0x68] sm:$0xff]  ;;  %v373_v27 = vld [vmem:[%s788_s2 + $0x70] sm:$0xff]  ;;  %s588_s27 = sld [smem:[#allocation4 + $0x2]] }
  0x21   :  { %v92_v28 = vadd.f32 %v88_v18, %v84_v8  ;;  %v93_v29 = vadd.f32 %v89_v19, %v85_v12  ;;  %v97_v30 = vmul.f32 %v370_v17, %v370_v17  ;;  %v102_v31 = vmul.f32 %v371_v21, %v371_v21  ;;  %v374_v36 = vld [vmem:[%s788_s2 + $0x78] sm:$0xff]  ;;  %s555_s2 = sld [smem:[#allocation2 + $0x2]] }
  0x22   :  { %v98_v32 = vadd.f32 %v94_v20, %v90_v22  ;;  %v99_v33 = vadd.f32 %v95_v24, %v91_v23  ;;  %v103_v34 = vmul.f32 %v372_v26, %v372_v26  ;;  %v104_v35 = vmul.f32 %v373_v27, %v373_v27  ;;  %s596_s28 = sld [smem:[#allocation4 + $0x1]] }
  0x23   :  { %v100_v37 = vadd.f32 %v96_v25, %v92_v28  ;;  %v101_v38 = vadd.f32 %v97_v30, %v93_v29  ;;  %v105_v39 = vmul.f32 %v374_v36, %v374_v36  ;;  %v110_v43 = vmul.f32 %v371_v21, %v63_v0  ;;  %s604_s29 = sld [smem:[#allocation4 + $0x3]] }
  0x24   :  { %v106_v40 = vadd.f32 %v102_v31, %v98_v32  ;;  %v107_v41 = vadd.f32 %v103_v34, %v99_v33  ;;  %v111_v45 = vmul.f32 %v372_v26, %v64_v1  ;;  %v112_v46 = vmul.f32 %v373_v27, %v65_v2  ;;  %s610_s30 = sld [smem:[#allocation4 + $0x4]] }
  0x25   :  { %v108_v42 = vadd.f32 %v104_v35, %v100_v37  ;;  %v115_v47 = vmul.f32 %v368_v15, %v364_v5  ;;  %v116_v48 = vmul.f32 %v369_v16, %v365_v9  ;;  %v109_v49 = vadd.f32 %v105_v39, %v101_v38  ;;  %s614_s4 = sld [smem:[#allocation4 + $0x6]] }
  0x26   :  { %v113_v50 = vmul.f32 %v374_v36, %v66_v3  ;;  %v117_v51 = vmul.f32 %v370_v17, %v366_v10  ;;  %v541_v52 = vadd.f32 -2.0, %v106_v40  ;;  %v543_v53 = vadd.f32 -2.0, %v107_v41  ;;  %s618_s5 = sld [smem:[#allocation4 + $0x5]] }
  0x27   :  { %v545_v54 = vadd.f32 -2.0, %v108_v42  ;;  %v118_v55 = vsub.f32 %v110_v43, %v114_v44  ;;  %v119_v56 = vsub.f32 %v111_v45, %v115_v47  ;;  %v120_v57 = vsub.f32 %v112_v46, %v116_v48  ;;  %s629_s6 = sld [smem:[#allocation2 + $0x4]] }
  0x28   :  { %v121_v58 = vsub.f32 %v113_v50, %v117_v51  ;;  %v547_v59 = vadd.f32 -2.0, %v109_v49  ;;  %v142_v60 = vstv %s39_s23  ;;  %v551_v61 = vmul.f32 %v541_v52, %v541_v52  ;;  %s655_s7 = sld [smem:[#allocation2 + $0x5]] }
  0x29   :  { %v143_v62 = vmul.f32 %v541_v52, %v142_v60  ;;  %v144_v63 = vmul.f32 %v543_v53, %v142_v60  ;;  %v145_v0 = vmul.f32 %v545_v54, %v142_v60  ;;  %v155_v1 = vstv %s347_s24  ;;  %s694_s8 = sld [smem:[#allocation4 + $0x7]] }
  0x2a   :  { %v122_v2 = vmul.f32 %v118_v55, %v118_v55  ;;  %v123_v3 = vmul.f32 %v119_v56, %v119_v56  ;;  %v124_v4 = vmul.f32 %v120_v57, %v120_v57  ;;  %v125_v5 = vmul.f32 %v121_v58, %v121_v58  ;;  %s57_s9 = sadd.f32 %s604_s29, %s596_s28 }
  0x2b   :  { %v564_v6 = vmul.f32 %v543_v53, %v543_v53  ;;  %v146_v7 = vmul.f32 %v547_v59, %v142_v60  ;;  %v147_v8 = vmul.f32 1.442695, %v143_v62  ;;  %v569_v9 = vmul.f32 %v545_v54, %v545_v54  ;;  %s711_s10 = sld [smem:[#allocation4 + $0x8]] }
  0x2c   :  { %v149_v10 = vmul.f32 1.442695, %v144_v63  ;;  %v156_v11 = vmul.f32 %v155_v1, %v551_v61  ;;  %v572_v12 = vadd.f32 -1.0, %v118_v55  ;;  %v574_v13 = vadd.f32 -1.0, %v119_v56  ;;  %s718_s11 = sld [smem:[#allocation4 + $0x9]] }
  0x2d   :  { %v578_v14 = vmul.f32 %v547_v59, %v547_v59  ;;  %v151_v15 = vmul.f32 1.442695, %v145_v0  ;;  %v580_v16 = vadd.f32 -2.0, %v122_v2  ;;  %v582_v17 = vadd.f32 -2.0, %v123_v3  ;;  %s724_s12 = sadd.f32 %s618_s5, %s57_s9 }
  0x2e   :  { %v584_v18 = vadd.f32 -2.0, %v124_v4  ;;  %v586_v19 = vadd.f32 -1.0, %v120_v57  ;;  %v590_v20 = vadd.f32 -2.0, %v125_v5  ;;  %389 = vpow2.f32 %v147_v8  ;;  %s729_s13 = sld [smem:[#allocation4 + $0xa]] }
  0x2f   :  { %v153_v21 = vmul.f32 1.442695, %v146_v7  ;;  %v157_v22 = vmul.f32 %v155_v1, %v564_v6  ;;  %v593_v23 = vadd.f32 -1.0, %v121_v58  ;;  %391 = vpow2.f32 %v149_v10  ;;  %s59_s14 = sadd.f32 %s694_s8, %s724_s12 }
  0x30   :  { %v158_v24 = vmul.f32 %v155_v1, %v569_v9  ;;  %v160_v25 = vmul.f32 1.442695, %v156_v11  ;;  %393 = vpow2.f32 %v151_v15  ;;  %v159_v26 = vmul.f32 %v155_v1, %v578_v14  ;;  %s746_s15 = sld [smem:[#allocation4 + $0xb]] }
  0x31   :  { %v601_v27 = vmul.f32 %v580_v16, %v580_v16  ;;  %v204_v28 = vstv %s555_s2  ;;  %v217_v32 = vstv %s558_s25  ;;  %395 = vpow2.f32 %v153_v21 }
  0x32   :  { %v205_v29 = vmul.f32 %v580_v16, %v204_v28  ;;  %v206_v30 = vmul.f32 %v582_v17, %v204_v28  ;;  %v207_v31 = vmul.f32 %v584_v18, %v204_v28  ;;  %v162_v33 = vmul.f32 1.442695, %v157_v22  ;;  %s754_s16 = sadd.f32 %s718_s11, %s59_s14 }
  0x33   :  { %v168_v34 = vstv %s560_s26  ;;  %v208_v35 = vmul.f32 %v590_v20, %v204_v28  ;;  %397 = vpow2.f32 %v160_v25  ;;  %v201_v36 = vmul.f32 %v582_v17, %v582_v17 }
  0x34   :  { %v209_v37 = vmul.f32 1.442695, %v205_v29  ;;  %v211_v38 = vmul.f32 1.442695, %v206_v30  ;;  %v622_v39 = vmul.f32 %v584_v18, %v584_v18  ;;  %v626_v40 = vmul.f32 %v590_v20, %v590_v20 }
  0x35   :  { %v213_v41 = vmul.f32 1.442695, %v207_v31  ;;  %v218_v42 = vmul.f32 %v217_v32, %v601_v27  ;;  %v164_v43 = vmul.f32 1.442695, %v158_v24  ;;  %v632_v44 = vmul.f32 %v541_v52, %v168_v34 }
  0x36   :  { %399 = vpow2.f32 %v209_v37  ;;  %v215_v45 = vmul.f32 1.442695, %v208_v35  ;;  %v166_v46 = vmul.f32 1.442695, %v159_v26  ;;  %v635_v47 = vmul.f32 %v543_v53, %v168_v34  ;;  %s61_s17 = sadd.f32 %s746_s15, %s754_s16 }
  0x37   :  { %401 = vpow2.f32 %v162_v33  ;;  %v182_v48 = vstv %s588_s27  ;;  %v639_v49 = vmul.f32 %v545_v54, %v168_v34  ;;  %v642_v50 = vmul.f32 %v547_v59, %v168_v34 }
  0x38   :  { %403 = vpow2.f32 %v211_v38  ;;  %v219_v51 = vmul.f32 %v217_v32, %v201_v36  ;;  %v220_v52 = vmul.f32 %v217_v32, %v622_v39  ;;  %v221_v55 = vmul.f32 %v217_v32, %v626_v40  ;;  %s62_s18 = ssub.f32 0.0, %s61_s17 }
  0x39   :  { %405 = vpow2.f32 %v213_v41  ;;  %v222_v56 = vmul.f32 1.442695, %v218_v42  ;;  %v647_v57 = vstv %s596_s28  ;;  %v650_v53 = vmul.f32 %v182_v48, %v551_v61 }
  0x3a   :  { %v653_v54 = vstv %s604_s29  ;;  %407 = vpow2.f32 %v215_v45  ;;  %v658_v58 = vmul.f32 %v182_v48, %v564_v6  ;;  %v661_v59 = vmul.f32 %v182_v48, %v569_v9 }
  0x3b   :  { %409 = vpow2.f32 %v164_v43  ;;  %v230_v60 = vstv %s610_s30  ;;  %v390_v62 = vpop.eup %389  ;;  %v665_v61 = vmul.f32 %v182_v48, %v578_v14  ;;  %v224_v63 = vmul.f32 1.442695, %v219_v51 }
  0x3c   :  { %411 = vpow2.f32 %v166_v46  ;;  %v244_v0 = vstv %s614_s4  ;;  %v392_v1 = vpop.eup %391  ;;  %v226_v2 = vmul.f32 1.442695, %v220_v52  ;;  %v228_v3 = vmul.f32 1.442695, %v221_v55 }
  0x3d   :  { %413 = vpow2.f32 %v222_v56  ;;  %v669_v4 = vstv %s618_s5  ;;  %v394_v5 = vpop.eup %393  ;;  %v231_v6 = vmul.f32 %v580_v16, %v230_v60  ;;  %v673_v7 = vmul.f32 %v582_v17, %v230_v60 }
  0x3e   :  { %v676_v8 = vmul.f32 %v584_v18, %v230_v60  ;;  %v270_v9 = vstv %s629_s6  ;;  %v680_v10 = vmul.f32 %v590_v20, %v230_v60  ;;  %v683_v11 = vmul.f32 %v244_v0, %v601_v27  ;;  %v396_v16 = vpop.eup %395 }
  0x3f   :  { %v685_v14 = vmul.f32 %v244_v0, %v201_v36  ;;  %v271_v15 = vmul.f32 %v572_v12, %v270_v9  ;;  %v174_v17 = vmul.f32 %v390_v62, %v647_v57  ;;  %415 = vpow2.f32 %v224_v63 }
  0x40   :  { %v691_v18 = vmul.f32 %v572_v12, %v572_v12  ;;  %v272_v21 = vmul.f32 %v574_v13, %v270_v9  ;;  %v398_v20 = vpop.eup %397  ;;  %v175_v22 = vmul.f32 %v392_v1, %v647_v57  ;;  %417 = vpow2.f32 %v226_v2 }
  0x41   :  { %v699_v24 = vmul.f32 %v574_v13, %v574_v13  ;;  %v273_v25 = vmul.f32 %v586_v19, %v270_v9  ;;  %v176_v26 = vmul.f32 %v394_v5, %v647_v57  ;;  %v274_v27 = vmul.f32 %v593_v23, %v270_v9 }
  0x42   :  { %v275_v28 = vmul.f32 1.442695, %v271_v15  ;;  %v277_v29 = vmul.f32 1.442695, %v272_v21  ;;  %419 = vpow2.f32 %v228_v3  ;;  %v708_v31 = vmul.f32 %v586_v19, %v586_v19 }
  0x43   :  { %v400_v30 = vpop.eup %399  ;;  %v279_v32 = vmul.f32 1.442695, %v273_v25  ;;  %v283_v33 = vstv %s655_s7  ;;  %v715_v35 = vmul.f32 %v593_v23, %v593_v23  ;;  %v281_v36 = vmul.f32 1.442695, %v274_v27 }
  0x44   :  { %v402_v34 = vpop.eup %401  ;;  %421 = vpow2.f32 %v275_v28  ;;  %v284_v37 = vmul.f32 %v283_v33, %v691_v18  ;;  %v236_v41 = vmul.f32 %v400_v30, %v669_v4  ;;  %v247_v42 = vmul.f32 %v244_v0, %v622_v39 }
  0x45   :  { %v404_v38 = vpop.eup %403  ;;  %423 = vpow2.f32 %v277_v29  ;;  %v285_v43 = vmul.f32 %v283_v33, %v699_v24  ;;  %v177_v46 = vmul.f32 %v396_v16, %v647_v57  ;;  %v178_v48 = vadd.f32 %v174_v17, %v632_v44 }
  0x46   :  { %v406_v45 = vpop.eup %405  ;;  %v248_v51 = vmul.f32 %v244_v0, %v626_v40  ;;  %425 = vpow2.f32 %v279_v32  ;;  %v179_v39 = vadd.f32 %v175_v22, %v635_v47  ;;  %v286_v55 = vmul.f32 %v283_v33, %v708_v31 }
  0x47   :  { %v408_v52 = vpop.eup %407  ;;  %427 = vpow2.f32 %v281_v36  ;;  %v288_v56 = vmul.f32 1.442695, %v284_v37  ;;  %v180_v57 = vadd.f32 %v176_v26, %v639_v49  ;;  %v237_v44 = vmul.f32 %v404_v38, %v669_v4 }
  0x48   :  { %v410_v60 = vpop.eup %409  ;;  %v287_v40 = vmul.f32 %v283_v33, %v715_v35  ;;  %v290_v62 = vmul.f32 1.442695, %v285_v43  ;;  %v238_v0 = vmul.f32 %v406_v45, %v669_v4  ;;  %v240_v1 = vadd.f32 %v236_v41, %v231_v6 }
  0x49   :  { %v412_v63 = vpop.eup %411  ;;  %v253_v2 = vstv %s694_s8  ;;  %429 = vpow2.f32 %v288_v56  ;;  %v187_v3 = vadd.f32 %v650_v53, %v178_v48  ;;  %v192_v5 = vmul.f32 %v398_v20, %v653_v54 }
  0x4a   :  { %v414_v47 = vpop.eup %413  ;;  %v239_v49 = vmul.f32 %v408_v52, %v669_v4  ;;  %431 = vpow2.f32 %v290_v62  ;;  %v181_v9 = vadd.f32 %v177_v46, %v642_v50  ;;  %v188_v15 = vadd.f32 %v658_v58, %v179_v39 }
  0x4b   :  { %v193_v16 = vmul.f32 %v402_v34, %v653_v54  ;;  %v292_v6 = vmul.f32 1.442695, %v286_v55  ;;  %v189_v17 = vadd.f32 %v661_v59, %v180_v57  ;;  %v241_v21 = vadd.f32 %v237_v44, %v673_v7 }
  0x4c   :  { %v294_v53 = vmul.f32 1.442695, %v287_v40  ;;  %v296_v20 = vstv %s711_s10  ;;  %v416_v4 = vpop.eup %415  ;;  %v242_v22 = vadd.f32 %v238_v0, %v676_v8  ;;  %v249_v50 = vadd.f32 %v683_v11, %v240_v1 }
  0x4d   :  { %v254_v25 = vmul.f32 %v414_v47, %v253_v2  ;;  %433 = vpow2.f32 %v292_v6  ;;  %v418_v58 = vpop.eup %417  ;;  %v194_v26 = vmul.f32 %v410_v60, %v653_v54  ;;  %v196_v27 = vadd.f32 %v192_v5, %v187_v3 }
  0x4e   :  { %v243_v59 = vadd.f32 %v239_v49, %v680_v10  ;;  %435 = vpow2.f32 %v294_v53  ;;  %v190_v7 = vadd.f32 %v665_v61, %v181_v9  ;;  %v195_v28 = vmul.f32 %v412_v63, %v653_v54 }
  0x4f   :  { %v301_v8 = vstv %s718_s11  ;;  %v310_v29 = vstv %s729_s13  ;;  %v420_v11 = vpop.eup %419  ;;  %v197_v30 = vadd.f32 %v193_v16, %v188_v15  ;;  %v250_v32 = vadd.f32 %v685_v14, %v241_v21 }
  0x50   :  { %v255_v33 = vmul.f32 %v416_v4, %v253_v2  ;;  %v297_v34 = vmul.f32 %v572_v12, %v296_v20  ;;  %v251_v37 = vadd.f32 %v247_v42, %v242_v22  ;;  %v256_v38 = vmul.f32 %v418_v58, %v253_v2 }
  0x51   :  { %v422_v36 = vpop.eup %421  ;;  %v258_v10 = vadd.f32 %v254_v25, %v249_v50  ;;  %v298_v41 = vmul.f32 %v574_v13, %v296_v20  ;;  %v252_v61 = vadd.f32 %v248_v51, %v243_v59  ;;  %v299_v54 = vmul.f32 %v586_v19, %v296_v20 }
  0x52   :  { %v424_v43 = vpop.eup %423  ;;  %v302_v45 = vmul.f32 %v422_v36, %v301_v8  ;;  %v311_v46 = vmul.f32 %v310_v29, %v691_v18  ;;  %v257_v14 = vmul.f32 %v420_v11, %v253_v2  ;;  %v300_v52 = vmul.f32 %v593_v23, %v296_v20 }
  0x53   :  { %v426_v48 = vpop.eup %425  ;;  %v303_v12 = vmul.f32 %v424_v43, %v301_v8  ;;  %v312_v42 = vmul.f32 %v310_v29, %v699_v24  ;;  %v259_v55 = vadd.f32 %v255_v33, %v250_v32  ;;  %v319_v60 = vstv %s746_s15 }
  0x54   :  { %v428_v39 = vpop.eup %427  ;;  %v304_v56 = vmul.f32 %v426_v48, %v301_v8  ;;  %v306_v13 = vadd.f32 %v302_v45, %v297_v34  ;;  %v198_v57 = vadd.f32 %v194_v26, %v189_v17  ;;  %v313_v19 = vmul.f32 %v310_v29, %v708_v31 }
  0x55   :  { %v305_v44 = vmul.f32 %v428_v39, %v301_v8  ;;  %v307_v51 = vadd.f32 %v303_v12, %v298_v41  ;;  %v260_v18 = vadd.f32 %v256_v38, %v251_v37  ;;  %v314_v63 = vmul.f32 %v310_v29, %v715_v35 }
  0x56   :  { %v430_v40 = vpop.eup %429  ;;  %v308_v62 = vadd.f32 %v304_v56, %v299_v54  ;;  %v315_v23 = vadd.f32 %v311_v46, %v306_v13  ;;  %v262_v1 = vadd.f32 %v258_v10, %v196_v27  ;;  %v199_v3 = vadd.f32 %v195_v28, %v190_v7 }
  0x57   :  { %v432_v0 = vpop.eup %431  ;;  %v309_v24 = vadd.f32 %v305_v44, %v300_v52  ;;  %v316_v2 = vadd.f32 %v312_v42, %v307_v51  ;;  %v320_v47 = vmul.f32 %v430_v40, %v319_v60  ;;  %v261_v5 = vadd.f32 %v257_v14, %v252_v61 }
  0x58   :  { %v263_v49 = vadd.f32 %v259_v55, %v197_v30  ;;  %v321_v9 = vmul.f32 %v432_v0, %v319_v60  ;;  %v317_v15 = vadd.f32 %v313_v19, %v308_v62  ;;  %v332_v21 = vstv %s62_s18 }
  0x59   :  { %v324_v16 = vadd.f32 %v320_v47, %v315_v23  ;;  %v318_v31 = vadd.f32 %v314_v63, %v309_v24  ;;  %v264_v20 = vadd.f32 %v260_v18, %v198_v57  ;;  %v265_v22 = vadd.f32 %v261_v5, %v199_v3 }
  0x5a   :  { %v434_v6 = vpop.eup %433  ;;  %v325_v17 = vadd.f32 %v321_v9, %v316_v2 }
  0x5b   :  { %v436_v53 = vpop.eup %435  ;;  %v322_v4 = vmul.f32 %v434_v6, %v319_v60  ;;  %v328_v35 = vadd.f32 %v324_v16, %v262_v1 }
  0x5c   :  { %v323_v50 = vmul.f32 %v436_v53, %v319_v60  ;;  %v329_v25 = vadd.f32 %v325_v17, %v263_v49 }
  0x5d   :  { %v326_v58 = vadd.f32 %v322_v4, %v317_v15  ;;  %v333_v26 = vadd.f32 %v332_v21, %v328_v35 }
  0x5e   :  { %v327_v27 = vadd.f32 %v323_v50, %v318_v31  ;;  %v334_v59 = vadd.f32 %v332_v21, %v329_v25 }
  0x5f   :  { %v330_v7 = vadd.f32 %v326_v58, %v264_v20  ;;  %337 = vst [vmem:[%s789_s3] sm:$0xff] %v333_v26 }
  0x60   :  { %v331_v28 = vadd.f32 %v327_v27, %v265_v22  ;;  %338 = vst [vmem:[%s789_s3 + $0x8] sm:$0xff] %v334_v59 }
  0x61   :  { %v335_v8 = vadd.f32 %v332_v21, %v330_v7 }
  0x62   :  { %v336_v29 = vadd.f32 %v332_v21, %v331_v28 }
  0x63   :  { %339 = vst [vmem:[%s789_s3 + $0x10] sm:$0xff] %v335_v8 }
  0x64   :  { %340 = vst [vmem:[%s789_s3 + $0x18] sm:$0xff] %v336_v29 }
  0x65   :  { %345 = vsyncpa [#allocation3], 1 }
  0x66   :  { %346 = vsyncpa [#allocation5], 1 }

</bundles_post_ra>
